<compile_context>
chip_gen: v7x
topology: tpu7x:2x2x1
jax: 0.10.0
libtpu: 0.0.40
codegen_flags: <defaults>
</compile_context>

<pallas_src>
import jax
import jax.numpy as jnp
from jax.experimental import pallas as pl
from jax.experimental.pallas import tpu as pltpu


def mlp_kernel(x_ref,
               w1_ref, b1_ref,
               w2_ref, b2_ref,
               w3_ref, b3_ref,
               w4_ref, b4_ref,
               w5_ref, b5_ref,
               o_ref):
    # Transposed layout: h is [features, batch_tile]; batch on the lane axis.
    h = x_ref[...]                                            # bf16 (in_pad, tile_b)

    def layer(w_ref, b_ref, h, relu=True):
        acc = jnp.dot(w_ref[...], h, preferred_element_type=jnp.float32)
        acc = acc + b_ref[...]                                # (out, 1) f32, lane broadcast
        if relu:
            acc = jnp.maximum(acc, 0.0)
        return acc.astype(jnp.bfloat16)                       # bf16 feed to next MXU pass

    h = layer(w1_ref, b1_ref, h)
    h = layer(w2_ref, b2_ref, h)
    h = layer(w3_ref, b3_ref, h)
    h = layer(w4_ref, b4_ref, h)

    # Final layer: no ReLU, keep f32 for the store.  Out rows are padded to 8,
    # so this is a fully sublane/lane-aligned matmul and an unmasked store.
    out = jnp.dot(w5_ref[...], h, preferred_element_type=jnp.float32) + b5_ref[...]
    o_ref[...] = out                                          # (8, tile_b) lane-dense store


def mlp_forward(x, params, *, tile_b=256):
    """x: [B, in_dim] float32.  params: list of (W [out,in] f32, b [out] f32) (PyTorch layout)."""
    B, in_dim = x.shape
    out_dim = params[-1][0].shape[0]

    tile_b = max(128, (tile_b // 128) * 128)          # lane-dense batch tile
    B_pad = ((B + tile_b - 1) // tile_b) * tile_b     # handles arbitrary B (e.g. 442)
    in_pad = ((in_dim + 7) // 8) * 8                  # pad features to a sublane multiple
    out_pad = ((out_dim + 7) // 8) * 8                # pad final out rows to a sublane multiple

    # Zero-pad batch/features, cast to bf16, transpose so batch lives on lanes.
    x_p = jnp.zeros((B_pad, in_pad), jnp.float32).at[:B, :in_dim].set(x)
    x_t = x_p.T.astype(jnp.bfloat16)                  # (in_pad, B_pad)

    flat_args = [x_t]
    in_specs = [pl.BlockSpec((in_pad, tile_b), lambda i: (0, i))]
    n_layers = len(params)
    for li, (w, b) in enumerate(params):
        w = w.astype(jnp.bfloat16)
        b = b.astype(jnp.float32)
        if li == 0 and w.shape[1] != in_pad:          # zero-pad W1's 'in' dim to match x
            w = jnp.zeros((w.shape[0], in_pad), jnp.bfloat16).at[:, :in_dim].set(w)
        if li == n_layers - 1 and w.shape[0] != out_pad:   # zero-pad final 'out' dim to 8
            w = jnp.zeros((out_pad, w.shape[1]), jnp.bfloat16).at[:out_dim, :].set(w)
            b = jnp.zeros((out_pad,), jnp.float32).at[:out_dim].set(b)
        b = b.reshape(-1, 1)                          # (out, 1): broadcasts over lanes
        flat_args += [w, b]
        # Full-array blocks, constant index_map -> VMEM-resident across grid steps.
        in_specs += [pl.BlockSpec(w.shape, lambda i: (0, 0)),
                     pl.BlockSpec(b.shape, lambda i: (0, 0))]

    out_t = pl.pallas_call(
        mlp_kernel,
        out_shape=jax.ShapeDtypeStruct((out_pad, B_pad), jnp.float32),
        grid_spec=pltpu.PrefetchScalarGridSpec(
            num_scalar_prefetch=0,
            grid=(B_pad // tile_b,),
            in_specs=in_specs,
            out_specs=pl.BlockSpec((out_pad, tile_b), lambda i: (0, i)),
        ),
        compiler_params=pltpu.CompilerParams(
            dimension_semantics=("parallel",),        # batch tiles shard across TCs (megacore)
        ),
    )(*flat_args)

    return out_t[:out_dim, :B].T                      # back to [B, out_dim]


def init_params(key, input_dim, output_dim):
    """Deterministic init matching the PyTorch module's layer shapes ([out, in] weights)."""
    dims = [input_dim, 128, 64, 32, 16, output_dim]
    params = []
    for i in range(len(dims) - 1):
        fan_in, fan_out = dims[i], dims[i + 1]
        key, kw, kb = jax.random.split(key, 3)
        bound = float(fan_in) ** -0.5
        w = jax.random.uniform(kw, (fan_out, fan_in), jnp.float32, -bound, bound)
        b = jax.random.uniform(kb, (fan_out,), jnp.float32, -bound, bound)
        params.append((w, b))
    return params


def mlp_reference(x, params):
    """Reference mirroring the kernel's numerics: bf16 weights/activations, f32 accumulation."""
    h = x.astype(jnp.bfloat16).astype(jnp.float32)
    for idx, (w, b) in enumerate(params):
        w32 = w.astype(jnp.bfloat16).astype(jnp.float32)
        h = h @ w32.T + b
        if idx < len(params) - 1:
            h = jnp.maximum(h, 0.0)
            h = h.astype(jnp.bfloat16).astype(jnp.float32)   # kernel feeds bf16 to next layer
    return h


if __name__ == "__main__":
    key = jax.random.PRNGKey(0)
    input_dim = 10    # load_diabetes has 10 features
    output_dim = 1
    batch = 442       # real load_diabetes size; exercises the batch-padding path

    key, kx = jax.random.split(key)
    x = jax.random.normal(kx, (batch, input_dim), jnp.float32)
    params = init_params(key, input_dim, output_dim)

    out = mlp_forward(x, params, tile_b=256)
    out = jax.block_until_ready(out)

    ref = mlp_reference(x, params)
    assert out.shape == (batch, output_dim)
    assert jnp.allclose(out, ref, atol=5e-2, rtol=5e-2), "mismatch vs reference"

    print("KERNEL_OK")
</pallas_src>

<mosaic_0001>
module attributes {stable_mosaic.version = 11 : i64} {
  func.func @mlp_kernel(%arg0: i32, %arg1: memref<16x256xbf16, #tpu.memory_space<vmem>>, %arg2: memref<128x16xbf16, #tpu.memory_space<vmem>>, %arg3: memref<128x1xf32, #tpu.memory_space<vmem>>, %arg4: memref<64x128xbf16, #tpu.memory_space<vmem>>, %arg5: memref<64x1xf32, #tpu.memory_space<vmem>>, %arg6: memref<32x64xbf16, #tpu.memory_space<vmem>>, %arg7: memref<32x1xf32, #tpu.memory_space<vmem>>, %arg8: memref<16x32xbf16, #tpu.memory_space<vmem>>, %arg9: memref<16x1xf32, #tpu.memory_space<vmem>>, %arg10: memref<8x16xbf16, #tpu.memory_space<vmem>>, %arg11: memref<8x1xf32, #tpu.memory_space<vmem>>, %arg12: memref<8x256xf32, #tpu.memory_space<vmem>>) attributes {dimension_semantics = [#tpu.dimension_semantics<parallel>], iteration_bounds = array<i64: 2>, scalar_prefetch = 0 : i64, scratch_operands = 0 : i64, tpu.core_type = #tpu.core_type<tc>, window_params = [{transform_indices = @transform_0, window_bounds = array<i64: 16, 256>}, {pipeline_mode = #tpu.pipeline_mode<synchronous>, transform_indices = @transform_1, window_bounds = array<i64: 128, 16>}, {pipeline_mode = #tpu.pipeline_mode<synchronous>, transform_indices = @transform_2, window_bounds = array<i64: 128, 1>}, {pipeline_mode = #tpu.pipeline_mode<synchronous>, transform_indices = @transform_3, window_bounds = array<i64: 64, 128>}, {pipeline_mode = #tpu.pipeline_mode<synchronous>, transform_indices = @transform_4, window_bounds = array<i64: 64, 1>}, {pipeline_mode = #tpu.pipeline_mode<synchronous>, transform_indices = @transform_5, window_bounds = array<i64: 32, 64>}, {pipeline_mode = #tpu.pipeline_mode<synchronous>, transform_indices = @transform_6, window_bounds = array<i64: 32, 1>}, {pipeline_mode = #tpu.pipeline_mode<synchronous>, transform_indices = @transform_7, window_bounds = array<i64: 16, 32>}, {pipeline_mode = #tpu.pipeline_mode<synchronous>, transform_indices = @transform_8, window_bounds = array<i64: 16, 1>}, {pipeline_mode = #tpu.pipeline_mode<synchronous>, transform_indices = @transform_9, window_bounds = array<i64: 8, 16>}, {pipeline_mode = #tpu.pipeline_mode<synchronous>, transform_indices = @transform_10, window_bounds = array<i64: 8, 1>}, {transform_indices = @transform_11, window_bounds = array<i64: 8, 256>}]} {
    %c0 = arith.constant 0 : index
    %c0_0 = arith.constant 0 : index
    %0 = vector.load %arg1[%c0, %c0_0] : memref<16x256xbf16, #tpu.memory_space<vmem>>, vector<16x256xbf16>
    %c0_1 = arith.constant 0 : index
    %c0_2 = arith.constant 0 : index
    %1 = vector.load %arg2[%c0_1, %c0_2] : memref<128x16xbf16, #tpu.memory_space<vmem>>, vector<128x16xbf16>
    %cst = arith.constant dense<0.000000e+00> : vector<128x256xf32>
    %2 = tpu.matmul %1, %0, %cst {dimension_numbers = #tpu.dot_dimension_numbers<[1], [0], [0], [1], [0, 0, 1, 1], [], []>} : vector<128x16xbf16>, vector<16x256xbf16>, vector<128x256xf32> -> vector<128x256xf32>
    %c0_3 = arith.constant 0 : index
    %c0_4 = arith.constant 0 : index
    %3 = vector.load %arg3[%c0_3, %c0_4] : memref<128x1xf32, #tpu.memory_space<vmem>>, vector<128x1xf32>
    %4 = vector.broadcast %3 : vector<128x1xf32> to vector<128x256xf32>
    %5 = arith.addf %2, %4 : vector<128x256xf32>
    %cst_5 = arith.constant 0.000000e+00 : f32
    %6 = vector.broadcast %cst_5 : f32 to vector<128x256xf32>
    %7 = arith.maximumf %5, %6 : vector<128x256xf32>
    %8 = arith.truncf %7 : vector<128x256xf32> to vector<128x256xbf16>
    %c0_6 = arith.constant 0 : index
    %c0_7 = arith.constant 0 : index
    %9 = vector.load %arg4[%c0_6, %c0_7] : memref<64x128xbf16, #tpu.memory_space<vmem>>, vector<64x128xbf16>
    %cst_8 = arith.constant dense<0.000000e+00> : vector<64x256xf32>
    %10 = tpu.matmul %9, %8, %cst_8 {dimension_numbers = #tpu.dot_dimension_numbers<[1], [0], [0], [1], [0, 0, 1, 1], [], []>} : vector<64x128xbf16>, vector<128x256xbf16>, vector<64x256xf32> -> vector<64x256xf32>
    %c0_9 = arith.constant 0 : index
    %c0_10 = arith.constant 0 : index
    %11 = vector.load %arg5[%c0_9, %c0_10] : memref<64x1xf32, #tpu.memory_space<vmem>>, vector<64x1xf32>
    %12 = vector.broadcast %11 : vector<64x1xf32> to vector<64x256xf32>
    %13 = arith.addf %10, %12 : vector<64x256xf32>
    %cst_11 = arith.constant 0.000000e+00 : f32
    %14 = vector.broadcast %cst_11 : f32 to vector<64x256xf32>
    %15 = arith.maximumf %13, %14 : vector<64x256xf32>
    %16 = arith.truncf %15 : vector<64x256xf32> to vector<64x256xbf16>
    %c0_12 = arith.constant 0 : index
    %c0_13 = arith.constant 0 : index
    %17 = vector.load %arg6[%c0_12, %c0_13] : memref<32x64xbf16, #tpu.memory_space<vmem>>, vector<32x64xbf16>
    %cst_14 = arith.constant dense<0.000000e+00> : vector<32x256xf32>
    %18 = tpu.matmul %17, %16, %cst_14 {dimension_numbers = #tpu.dot_dimension_numbers<[1], [0], [0], [1], [0, 0, 1, 1], [], []>} : vector<32x64xbf16>, vector<64x256xbf16>, vector<32x256xf32> -> vector<32x256xf32>
    %c0_15 = arith.constant 0 : index
    %c0_16 = arith.constant 0 : index
    %19 = vector.load %arg7[%c0_15, %c0_16] : memref<32x1xf32, #tpu.memory_space<vmem>>, vector<32x1xf32>
    %20 = vector.broadcast %19 : vector<32x1xf32> to vector<32x256xf32>
    %21 = arith.addf %18, %20 : vector<32x256xf32>
    %cst_17 = arith.constant 0.000000e+00 : f32
    %22 = vector.broadcast %cst_17 : f32 to vector<32x256xf32>
    %23 = arith.maximumf %21, %22 : vector<32x256xf32>
    %24 = arith.truncf %23 : vector<32x256xf32> to vector<32x256xbf16>
    %c0_18 = arith.constant 0 : index
    %c0_19 = arith.constant 0 : index
    %25 = vector.load %arg8[%c0_18, %c0_19] : memref<16x32xbf16, #tpu.memory_space<vmem>>, vector<16x32xbf16>
    %cst_20 = arith.constant dense<0.000000e+00> : vector<16x256xf32>
    %26 = tpu.matmul %25, %24, %cst_20 {dimension_numbers = #tpu.dot_dimension_numbers<[1], [0], [0], [1], [0, 0, 1, 1], [], []>} : vector<16x32xbf16>, vector<32x256xbf16>, vector<16x256xf32> -> vector<16x256xf32>
    %c0_21 = arith.constant 0 : index
    %c0_22 = arith.constant 0 : index
    %27 = vector.load %arg9[%c0_21, %c0_22] : memref<16x1xf32, #tpu.memory_space<vmem>>, vector<16x1xf32>
    %28 = vector.broadcast %27 : vector<16x1xf32> to vector<16x256xf32>
    %29 = arith.addf %26, %28 : vector<16x256xf32>
    %cst_23 = arith.constant 0.000000e+00 : f32
    %30 = vector.broadcast %cst_23 : f32 to vector<16x256xf32>
    %31 = arith.maximumf %29, %30 : vector<16x256xf32>
    %32 = arith.truncf %31 : vector<16x256xf32> to vector<16x256xbf16>
    %c0_24 = arith.constant 0 : index
    %c0_25 = arith.constant 0 : index
    %33 = vector.load %arg10[%c0_24, %c0_25] : memref<8x16xbf16, #tpu.memory_space<vmem>>, vector<8x16xbf16>
    %cst_26 = arith.constant dense<0.000000e+00> : vector<8x256xf32>
    %34 = tpu.matmul %33, %32, %cst_26 {dimension_numbers = #tpu.dot_dimension_numbers<[1], [0], [0], [1], [0, 0, 1, 1], [], []>} : vector<8x16xbf16>, vector<16x256xbf16>, vector<8x256xf32> -> vector<8x256xf32>
    %c0_27 = arith.constant 0 : index
    %c0_28 = arith.constant 0 : index
    %35 = vector.load %arg11[%c0_27, %c0_28] : memref<8x1xf32, #tpu.memory_space<vmem>>, vector<8x1xf32>
    %36 = vector.broadcast %35 : vector<8x1xf32> to vector<8x256xf32>
    %37 = arith.addf %34, %36 : vector<8x256xf32>
    %c0_29 = arith.constant 0 : index
    %c0_30 = arith.constant 0 : index
    %38 = vector.load %arg12[%c0_29, %c0_30] : memref<8x256xf32, #tpu.memory_space<vmem>>, vector<8x256xf32>
    tpu.vector_store %arg12[%c0_29, %c0_30], %37 {strides = array<i32>} : memref<8x256xf32, #tpu.memory_space<vmem>>, vector<8x256xf32>,
    return
  }
  func.func @transform_0(%arg0: i32) -> (i32, i32) {
    %c0_i32 = arith.constant 0 : i32
    %c0_i32_0 = arith.constant 0 : i32
    return %c0_i32, %arg0 : i32, i32
  }
  func.func @transform_1(%arg0: i32) -> (i32, i32) {
    %c0_i32 = arith.constant 0 : i32
    %c0_i32_0 = arith.constant 0 : i32
    %c0_i32_1 = arith.constant 0 : i32
    return %c0_i32, %c0_i32_0 : i32, i32
  }
  func.func @transform_2(%arg0: i32) -> (i32, i32) {
    %c0_i32 = arith.constant 0 : i32
    %c0_i32_0 = arith.constant 0 : i32
    %c0_i32_1 = arith.constant 0 : i32
    return %c0_i32, %c0_i32_0 : i32, i32
  }
  func.func @transform_3(%arg0: i32) -> (i32, i32) {
    %c0_i32 = arith.constant 0 : i32
    %c0_i32_0 = arith.constant 0 : i32
    %c0_i32_1 = arith.constant 0 : i32
    return %c0_i32, %c0_i32_0 : i32, i32
  }
  func.func @transform_4(%arg0: i32) -> (i32, i32) {
    %c0_i32 = arith.constant 0 : i32
    %c0_i32_0 = arith.constant 0 : i32
    %c0_i32_1 = arith.constant 0 : i32
    return %c0_i32, %c0_i32_0 : i32, i32
  }
  func.func @transform_5(%arg0: i32) -> (i32, i32) {
    %c0_i32 = arith.constant 0 : i32
    %c0_i32_0 = arith.constant 0 : i32
    %c0_i32_1 = arith.constant 0 : i32
    return %c0_i32, %c0_i32_0 : i32, i32
  }
  func.func @transform_6(%arg0: i32) -> (i32, i32) {
    %c0_i32 = arith.constant 0 : i32
    %c0_i32_0 = arith.constant 0 : i32
    %c0_i32_1 = arith.constant 0 : i32
    return %c0_i32, %c0_i32_0 : i32, i32
  }
  func.func @transform_7(%arg0: i32) -> (i32, i32) {
    %c0_i32 = arith.constant 0 : i32
    %c0_i32_0 = arith.constant 0 : i32
    %c0_i32_1 = arith.constant 0 : i32
    return %c0_i32, %c0_i32_0 : i32, i32
  }
  func.func @transform_8(%arg0: i32) -> (i32, i32) {
    %c0_i32 = arith.constant 0 : i32
    %c0_i32_0 = arith.constant 0 : i32
    %c0_i32_1 = arith.constant 0 : i32
    return %c0_i32, %c0_i32_0 : i32, i32
  }
  func.func @transform_9(%arg0: i32) -> (i32, i32) {
    %c0_i32 = arith.constant 0 : i32
    %c0_i32_0 = arith.constant 0 : i32
    %c0_i32_1 = arith.constant 0 : i32
    return %c0_i32, %c0_i32_0 : i32, i32
  }
  func.func @transform_10(%arg0: i32) -> (i32, i32) {
    %c0_i32 = arith.constant 0 : i32
    %c0_i32_0 = arith.constant 0 : i32
    %c0_i32_1 = arith.constant 0 : i32
    return %c0_i32, %c0_i32_0 : i32, i32
  }
  func.func @transform_11(%arg0: i32) -> (i32, i32) {
    %c0_i32 = arith.constant 0 : i32
    %c0_i32_0 = arith.constant 0 : i32
    return %c0_i32, %arg0 : i32, i32
  }
}

</mosaic_0001>

<bundles_post_ra>
// kernel: tpu_custom_call.1
= control target key start
LH: loop header
LB: loop body
LE: loop exit
PB: predicated region body
PF: predicated region fallthrough
CT: control target
= control target key end

     0   :  { %16 = vsyncpa [#allocation4], 0  ;;  %s1781_s0 = inlined_call_operand.vmem [shape: bf16[16,512], index: 0, kind: input, shape index: {}]   ;;  %s1782_s1 = inlined_call_operand.vmem [shape: bf16[128,16], index: 1, kind: input, shape index: {}]   ;;  %s1783_s2 = inlined_call_operand.vmem [shape: f32[128,1], index: 2, kind: input, shape index: {}]   ;;  %s1784_s3 = inlined_call_operand.vmem [shape: bf16[64,128], index: 3, kind: input, shape index: {}]   ;;  %s1785_s4 = inlined_call_operand.vmem [shape: f32[64,1], index: 4, kind: input, shape index: {}]   ;;  %s1786_s5 = inlined_call_operand.vmem [shape: bf16[32,64], index: 5, kind: input, shape index: {}]   ;;  %s1787_s6 = inlined_call_operand.vmem [shape: f32[32,1], index: 6, kind: input, shape index: {}]   ;;  %s1788_s7 = inlined_call_operand.vmem [shape: bf16[16,32], index: 7, kind: input, shape index: {}]   ;;  %s1789_s8 = inlined_call_operand.vmem [shape: f32[16,1], index: 8, kind: input, shape index: {}]   ;;  %s1790_s9 = inlined_call_operand.vmem [shape: bf16[8,16], index: 9, kind: input, shape index: {}]   ;;  %s1791_s10 = inlined_call_operand.vmem [shape: f32[8,1], index: 10, kind: input, shape index: {}]   ;;  %s1792_s11 = inlined_call_operand.hbm [shape: f32[8,512], index: 11, kind: output, shape index: {}]  }
   0x1   :  { %18 = vsyncpa [#allocation4 + $0x1], 0  ;;  %s1500_s17 = smov 0   ;;  %s1502_s18 = smov 0  }
   0x2   :  { %s1504_s19 = smov 0   ;;  %s1506_s20 = smov 0  }
   0x3 LB: > { %s1794_s21 = sadd.s32 4294967295, %s1436_s20   ;;  %s1269_s22 = sadd.s32 4294967294, %s1436_s20   ;;  %s1436_s20 = sphi %s1506_s20, %s1802_s20   ;;  %s1432_s19 = sphi %s1504_s19, %s1801_s19   ;;  %s1428_s18 = sphi %s1502_s18, %s1800_s18   ;;  %s1424_s17 = sphi %s1500_s17, %s1799_s17  }
   0x4   : > { %s1523_s23 = sadd.s32 1, %s1436_s20   ;;  %s31_s24 = sadd.s32 1, %s1432_s19 }
   0x5   : > { %s28_s25 = ssub.s32 %s1436_s20, %s1523_s23  ;;  %p38_p0 = scmp.ne.s32.totalorder %s1432_s19, %s1428_s18 }
   0x6   : > { %p29_p1 = scmp.eq.s32.totalorder %s28_s25, 0  ;;  %p39_p2 = scmp.eq.s32.totalorder %s1436_s20, 0 }
   0x7   : > { %p278_p3 = scmp.eq.s32.totalorder %s1794_s21, 1  ;;  %p283_p4 = scmp.ne.s32.totalorder %s1428_s18, %s1424_s17 }
   0x8   : > { %s1536_s26 = scalar_select %p29_p1, %s1432_s19, %s31_s24  }
   0x9   : > { %p40_p5 = por %p39_p2, %p38_p0  ;;  %p1538_p6 = por %p278_p3, %p38_p0 }
   0xa   : > { %p284_p7 = scmp.eq.s32.totalorder %s1269_s22, 1  ;;  %p1271_p9 = scmp.ge.s32.totalorder %s1436_s20, 2 }
   0xc   : > { %p1542_p8 = por %p284_p7, %p283_p4  ;;  %330 = sbr.rel (%p1271_p9) target bundleno = 26 (0x1a), region = 56 }
  0x13   : > { %333 = sbr.rel (!%p40_p5) target bundleno = 26 (0x1a), region = 60  ;;  %s335_s29 = sand.u32 (%p40_p5), 1, %s1432_s19  }
  0x14   : > { %s1312_s30 = sshll.u32 (%p40_p5), %s1436_s20, 3  ;;  %s1272_s12 = sshll.u32 (%p40_p5), %s335_s29, 4 }
  0x15   : > { %s340_s15 = scalar_lea.vmem (%p40_p5), %s1781_s0, %s1312_s30  ;;  %s337_s16 = scalar_lea.vmem (%p40_p5), [#allocation2], %s1272_s12 }
  0x16   : > { %v370_v0 = vld [vmem:[%s340_s15] sm:$0xff] (%p40_p5)  ;;  %v372_v1 = vld [vmem:[%s340_s15 + $0x10] sm:$0xff] (%p40_p5) }
  0x17   : > { %371 = vst [vmem:[%s337_s16] sm:$0xff] (%p40_p5), %v370_v0  ;;  %373 = vst [vmem:[%s337_s16 + $0x8] sm:$0xff] (%p40_p5), %v372_v1 }
  0x1a PF: > { %p1275_p10 = scmp.ge.s32.totalorder %s1436_s20, 1  ;;  %p378_p11 = scmp.lt.s32.totalorder %s1436_s20, 3 }
  0x1c   : > { %p379_p12 = pnand %p1275_p10, %p378_p11 }
  0x1d   : > { %s1793_s22 = sand.u32 (!%p379_p12), 1, %s1428_s18   ;;  %v1438_v2 = vmov (!%p379_p12), 0   ;;  %v1359_v5 = vld [vmem:[%s1782_s1] sm:$0xff] (!%p379_p12)   ;;  %vm591_vm0 = vcmask (!%p379_p12), 130048   ;;  %v447_v7 = vld [vmem:[%s1783_s2 + $0x10] sm:$0xff] (!%p379_p12)  ;;  %v446_v8 = vld [vmem:[%s1783_s2 + $0x8] sm:$0xff] (!%p379_p12) }
  0x1e   : > { %382 = sbr.rel (%p379_p12) target bundleno = 1254 (0x4e6), region = 98  ;;  %s1559_s24 = sshll.u32 (!%p379_p12), %s1793_s22, 4  ;;  %648 = vmatprep.mubr.bf16.mxu0 (!%p379_p12), %v1438_v2  ;;  %1354 = vset.pattern.permute.xlu0 (!%p379_p12), %v1438_v2  ;;  %v445_v6 = vld [vmem:[%s1783_s2] sm:$0xff] (!%p379_p12)  ;;  %v448_v9 = vld [vmem:[%s1783_s2 + $0x18] sm:$0xff] (!%p379_p12)  ;;  %v1360_v10 = vld [vmem:[%s1782_s1 + $0x8] sm:$0xff] (!%p379_p12)   ;;  %vm992_vm1 = vcmask (!%p379_p12), 523264  }
  0x1f   : > { %1355 = vset.pattern.permute.xlu1 (!%p379_p12), %v1438_v2  ;;  %889 = vmatprep.mubr.bf16.mxu1 (!%p379_p12), %v1438_v2  ;;  %s387_s25 = scalar_lea.vmem (!%p379_p12), [#allocation2], %s1559_s24  ;;  %v449_v11 = vld [vmem:[%s1783_s2 + $0x20] sm:$0xff] (!%p379_p12)  ;;  %v450_v12 = vld [vmem:[%s1783_s2 + $0x28] sm:$0xff] (!%p379_p12)  ;;  %v1361_v13 = vld [vmem:[%s1782_s1 + $0x10] sm:$0xff] (!%p379_p12)   ;;  %vm1083_vm2 = vcmask (!%p379_p12), 261120   ;;  %s1797_s14 = sadd.s32 (!%p379_p12), 4294967295, %s1436_s20  }
  0x20   : > { %v1356_v3 = vld [vmem:[%s387_s25 + $0x4] ss:$8 sps:$4 sm:$0xff] (!%p379_p12)   ;;  %v1358_v4 = vld [vmem:[%s387_s25] ss:$8 sps:$4 sm:$0xff] (!%p379_p12)   ;;  %463 = vperm.xlu0 (!%p379_p12), %1354, %v445_v6   ;;  %473 = vperm.xlu1 (!%p379_p12), %1355, %v447_v7   ;;  %s1313_s15 = sshll.u32 (!%p379_p12), %s1797_s14, 8  ;;  %s423_s16 = scalar_lea.vmem (!%p379_p12), [#allocation3], %s1559_s24 }
  0x21   : > { %616 = vmatprep.subr.bf16.mxu0 (!%p379_p12), %v1356_v3  ;;  %v451_v14 = vld [vmem:[%s1783_s2 + $0x30] sm:$0xff] (!%p379_p12)  ;;  %v452_v15 = vld [vmem:[%s1783_s2 + $0x38] sm:$0xff] (!%p379_p12)  ;;  %v453_v16 = vld [vmem:[%s1783_s2 + $0x40] sm:$0xff] (!%p379_p12)  ;;  %s1204_s25 = sshll.u32 (!%p379_p12), %s423_s16, 4  ;;  %s1736_s29 = scalar_lea.hbm (!%p379_p12), %s1792_s11, %s1313_s15  ;;  %s1738_s25 = int_to_ptr.vmem [resolvable:$true] %s1204_s25 }
  0x22   : > { %617 = vmatpush1.bf16.msra.mxu0 (!%p379_p12), %v1358_v4  ;;  %v454_v17 = vld [vmem:[%s1783_s2 + $0x48] sm:$0xff] (!%p379_p12)  ;;  %v455_v18 = vld [vmem:[%s1783_s2 + $0x50] sm:$0xff] (!%p379_p12)  ;;  %v456_v19 = vld [vmem:[%s1783_s2 + $0x58] sm:$0xff] (!%p379_p12)  ;;  %s1798_s24 = sand.u32 (!%p379_p12), 1, %s1428_s18   ;;  %s1374_s12 = scalar_lea.vmem (!%p379_p12), %s1738_s25, 256 }
  0x23   : > { %v1362_v20 = vld [vmem:[%s1782_s1 + $0x18] sm:$0xff] (!%p379_p12)   ;;  %v457_v21 = vld [vmem:[%s1783_s2 + $0x60] sm:$0xff] (!%p379_p12)  ;;  %v458_v22 = vld [vmem:[%s1783_s2 + $0x68] sm:$0xff] (!%p379_p12)  ;;  %s1190_s30 = scalar_lea.sflag (!%p379_p12), [#allocation4], %s1798_s24  ;;  %p1375_p13 = scmp.ne.s32.totalorder (!%p379_p12), %s1738_s25, %s1374_s12 }
  0x24   : > { %468 = vperm.xlu0 (!%p379_p12), %1354, %v446_v8   ;;  %478 = vperm.xlu1 (!%p379_p12), %1355, %v448_v9   ;;  %v459_v23 = vld [vmem:[%s1783_s2 + $0x70] sm:$0xff] (!%p379_p12)  ;;  %v460_v24 = vld [vmem:[%s1783_s2 + $0x78] sm:$0xff] (!%p379_p12)  ;;  %v1363_v25 = vld [vmem:[%s1782_s1 + $0x20] sm:$0xff] (!%p379_p12)   ;;  %s1439_s13 = smov (!%p379_p12), [#allocation3]  }
  0x25   : > { %1288 = vmatmul.mubr.msk.bf16.vlgmr.msra.gmra.mrb[0].mxu0 %vm591_vm0, %v1359_v5  ;;  %v785_v26 = vld [vmem:[%s1785_s4] sm:$0xff]  ;;  %v786_v27 = vld [vmem:[%s1785_s4 + $0x8] sm:$0xff]  ;;  %v787_v28 = vld [vmem:[%s1785_s4 + $0x10] sm:$0xff]  ;;  %p1376_p0 = pnand %p1375_p13, %p1538_p6  ;;  %s1378_s14 = sshll.u32 %s1439_s13, 4  ;;  %s1379_s14 = int_to_ptr.vmem [resolvable:$false] %s1378_s14 }
  0x26   : > { %658 = vmatprep.mubr.bf16.mxu0 %v1438_v2  ;;  %v788_v29 = vld [vmem:[%s1785_s4 + $0x18] sm:$0xff]  ;;  %v1364_v30 = vld [vmem:[%s1782_s1 + $0x28] sm:$0xff]   ;;  %v789_v31 = vld [vmem:[%s1785_s4 + $0x20] sm:$0xff]  ;;  %s1380_s15 = scalar_lea.vmem %s1379_s14, 512  ;;  %p1381_p2 = scmp.lt.s32.totalorder %s1738_s25, %s1379_s14 }
  0x27   : > { %v790_v32 = vld [vmem:[%s1785_s4 + $0x28] sm:$0xff]  ;;  %v791_v33 = vld [vmem:[%s1785_s4 + $0x30] sm:$0xff]  ;;  %v792_v34 = vld [vmem:[%s1785_s4 + $0x38] sm:$0xff]  ;;  %p1377_p1 = pneg %p1376_p0  ;;  %p1382_p3 = scmp.lt.s32.totalorder %s1380_s15, %s1374_s12 }
  0x28   : > { %483 = vperm.xlu0 %1354, %v449_v11   ;;  %488 = vperm.xlu1 %1355, %v450_v12   ;;  %v1365_v35 = vld [vmem:[%s1782_s1 + $0x30] sm:$0xff]   ;;  %v958_v36 = vld [vmem:[%s1787_s6] sm:$0xff]  ;;  %v959_v37 = vld [vmem:[%s1787_s6 + $0x8] sm:$0xff] }
  0x29   : > { %v960_v38 = vld [vmem:[%s1787_s6 + $0x10] sm:$0xff]  ;;  %v961_v39 = vld [vmem:[%s1787_s6 + $0x18] sm:$0xff]  ;;  %v1066_v41 = vld [vmem:[%s1789_s8] sm:$0xff]  ;;  %p1383_p4 = por %p1382_p3, %p1381_p2 }
  0x2a   : > { %v1366_v40 = vld [vmem:[%s1782_s1 + $0x38] sm:$0xff]   ;;  %v1067_v42 = vld [vmem:[%s1789_s8 + $0x8] sm:$0xff]  ;;  %v1137_v43 = vld [vmem:[%s1791_s10] sm:$0xff] }
  0x2b   : > { %p1384_p5 = pnand %p1383_p4, %p1377_p1 }
  0x2c   : > { %493 = vperm.xlu0 %1354, %v451_v14   ;;  %498 = vperm.xlu1 %1355, %v452_v15  }
  0x2d   : > { %1289 = vmatmul.mubr.msk.bf16.gmra.mrb[4].mxu0 %vm591_vm0, %v1360_v10 }
  0x2e   : > { %668 = vmatprep.mubr.bf16.mxu0 %v1438_v2 }
  0x30   : > { %503 = vperm.xlu0 %1354, %v453_v16   ;;  %508 = vperm.xlu1 %1355, %v454_v17  }
  0x34   : > { %513 = vperm.xlu0 %1354, %v455_v18   ;;  %518 = vperm.xlu1 %1355, %v456_v19  }
  0x35   : > { %1290 = vmatmul.mubr.msk.bf16.gmra.mrb[8].mxu0 %vm591_vm0, %v1361_v13 }
  0x36   : > { %678 = vmatprep.mubr.bf16.mxu0 %v1438_v2 }
  0x38   : > { %523 = vperm.xlu0 %1354, %v457_v21   ;;  %528 = vperm.xlu1 %1355, %v458_v22  }
  0x3c   : > { %533 = vperm.xlu0 %1354, %v459_v23   ;;  %538 = vperm.xlu1 %1355, %v460_v24  }
  0x3d   : > { %1291 = vmatmul.mubr.msk.bf16.gmra.mrb[12].mxu0 %vm591_vm0, %v1362_v20 }
  0x3e   : > { %688 = vmatprep.mubr.bf16.mxu0 %v1438_v2 }
  0x40   : > { %795 = vperm.xlu0 %1354, %v785_v26   ;;  %800 = vperm.xlu1 %1355, %v786_v27  }
  0x44   : > { %805 = vperm.xlu0 %1354, %v787_v28   ;;  %810 = vperm.xlu1 %1355, %v788_v29  }
  0x45   : > { %1292 = vmatmul.mubr.msk.bf16.gmra.mrb[16].mxu0 %vm591_vm0, %v1363_v25 }
  0x46   : > { %698 = vmatprep.mubr.bf16.mxu0 %v1438_v2 }
  0x48   : > { %815 = vperm.xlu0 %1354, %v789_v31   ;;  %820 = vperm.xlu1 %1355, %v790_v32  }
  0x4c   : > { %825 = vperm.xlu0 %1354, %v791_v33   ;;  %830 = vperm.xlu1 %1355, %v792_v34  }
  0x4d   : > { %1293 = vmatmul.mubr.msk.bf16.gmra.mrb[20].mxu0 %vm591_vm0, %v1364_v30 }
  0x4e   : > { %708 = vmatprep.mubr.bf16.mxu0 %v1438_v2 }
  0x50   : > { %964 = vperm.xlu0 %1354, %v958_v36   ;;  %969 = vperm.xlu1 %1355, %v959_v37  }
  0x54   : > { %974 = vperm.xlu0 %1354, %v960_v38   ;;  %979 = vperm.xlu1 %1355, %v961_v39  }
  0x55   : > { %1294 = vmatmul.mubr.msk.bf16.gmra.mrb[24].mxu0 %vm591_vm0, %v1365_v35 }
  0x56   : > { %718 = vmatprep.mubr.bf16.mxu0 %v1438_v2 }
  0x58   : > { %1070 = vperm.xlu0 %1354, %v1066_v41   ;;  %1075 = vperm.xlu1 %1355, %v1067_v42  }
  0x5c   : > { %1140 = vperm.xlu0 %1354, %v1137_v43  }
  0x5d   : > { %1295 = vmatmul.mubr.msk.bf16.gmra.mrb[28].mxu0 %vm591_vm0, %v1366_v40 }
  0x5e   : > { %1119 = vmatprep.mubr.bf16.mxu0 %v1438_v2 }
  0x9f   : > { %v464_v44 = vpop.permute.xlu0 %463  ;;  %v474_v53 = vpop.permute.xlu1 %473 }
  0xa3   : > { %v469_v48 = vpop.permute.xlu0 %468  ;;  %v479_v0 = vpop.permute.xlu1 %478 }
  0xa7   : > { %v484_v12 = vpop.permute.xlu0 %483  ;;  %v489_v17 = vpop.permute.xlu1 %488 }
  0xab   : > { %v494_v28 = vpop.permute.xlu0 %493  ;;  %v499_v33 = vpop.permute.xlu1 %498 }
  0xf8   : > { %v650_v45 = vpop.f32.mrb[0].mxu0 }
  0xf9   : > { %v651_v46 = vadd.f32 %v650_v45, %v464_v44  ;;  %v652_v47 = vpop.f32.mrb[1].mxu0 }
  0xfa   : > { %v653_v49 = vadd.f32 %v652_v47, %v464_v44  ;;  %v654_v50 = vpop.f32.mrb[2].mxu0  ;;  %v504_v44 = vpop.permute.xlu0 %503 }
  0xfb   : > { %v655_v51 = vadd.f32 %v654_v50, %v469_v48  ;;  %v656_v52 = vpop.f32.mrb[3].mxu0  ;;  %v729_v55 = vmax.f32 %v651_v46, 0.0 }
  0xfc   : > { %v657_v54 = vadd.f32 %v656_v52, %v469_v48  ;;  %v730_v57 = vmax.f32 %v653_v49, 0.0  ;;  %v509_v49 = vpop.permute.xlu1 %508 }
  0xfd   : > { %v731_v56 = vmax.f32 %v655_v51, 0.0 }
  0xfe   : > { %v732_v58 = vmax.f32 %v657_v54, 0.0 }
  0xff   : > { %v761_v59 = vpack.c.bf16 %v731_v56, %v729_v55 }
 0x100   : > { %v660_v60 = vpop.f32.mrb[4].mxu0  ;;  %v762_v61 = vpack.c.bf16 %v732_v58, %v730_v57 }
 0x101   : > { %v661_v62 = vadd.f32 %v660_v60, %v474_v53  ;;  %v662_v63 = vpop.f32.mrb[5].mxu0  ;;  %v514_v60 = vpop.permute.xlu0 %513 }
 0x102   : > { %v663_v1 = vadd.f32 %v662_v63, %v474_v53  ;;  %v664_v3 = vpop.f32.mrb[6].mxu0  ;;  %857 = vmatprep.subr.bf16.mxu1 %v762_v61 }
 0x103   : > { %v665_v4 = vadd.f32 %v664_v3, %v479_v0  ;;  %v666_v5 = vpop.f32.mrb[7].mxu0  ;;  %858 = vmatpush1.bf16.msra.mxu1 %v761_v59  ;;  %v733_v7 = vmax.f32 %v661_v62, 0.0 }
 0x104   : > { %v667_v6 = vadd.f32 %v666_v5, %v479_v0  ;;  %v734_v9 = vmax.f32 %v663_v1, 0.0  ;;  %v519_v1 = vpop.permute.xlu1 %518 }
 0x105   : > { %v735_v8 = vmax.f32 %v665_v4, 0.0 }
 0x106   : > { %v736_v10 = vmax.f32 %v667_v6, 0.0 }
 0x107   : > { %v763_v11 = vpack.c.bf16 %v735_v8, %v733_v7 }
 0x108   : > { %v764_v13 = vpack.c.bf16 %v736_v10, %v734_v9  ;;  %v670_v14 = vpop.f32.mrb[8].mxu0 }
 0x109   : > { %v671_v15 = vadd.f32 %v670_v14, %v484_v12  ;;  %v672_v16 = vpop.f32.mrb[9].mxu0 }
 0x10a   : > { %v673_v18 = vadd.f32 %v672_v16, %v484_v12  ;;  %v674_v19 = vpop.f32.mrb[10].mxu0  ;;  %859 = vmatprep.subr.bf16.mxu1 %v764_v13  ;;  %v524_v13 = vpop.permute.xlu0 %523 }
 0x10b   : > { %v675_v20 = vadd.f32 %v674_v19, %v489_v17  ;;  %v676_v21 = vpop.f32.mrb[11].mxu0  ;;  %860 = vmatpush1.bf16.msra.mxu1 %v763_v11  ;;  %v737_v23 = vmax.f32 %v671_v15, 0.0 }
 0x10c   : > { %v677_v22 = vadd.f32 %v676_v21, %v489_v17  ;;  %v738_v25 = vmax.f32 %v673_v18, 0.0  ;;  %v529_v18 = vpop.permute.xlu1 %528 }
 0x10d   : > { %v739_v24 = vmax.f32 %v675_v20, 0.0 }
 0x10e   : > { %v740_v26 = vmax.f32 %v677_v22, 0.0 }
 0x10f   : > { %v765_v27 = vpack.c.bf16 %v739_v24, %v737_v23 }
 0x110   : > { %v766_v29 = vpack.c.bf16 %v740_v26, %v738_v25  ;;  %v680_v30 = vpop.f32.mrb[12].mxu0 }
 0x111   : > { %v681_v31 = vadd.f32 %v680_v30, %v494_v28  ;;  %v682_v32 = vpop.f32.mrb[13].mxu0 }
 0x112   : > { %v683_v34 = vadd.f32 %v682_v32, %v494_v28  ;;  %v684_v35 = vpop.f32.mrb[14].mxu0  ;;  %861 = vmatprep.subr.bf16.mxu1 %v766_v29  ;;  %v534_v29 = vpop.permute.xlu0 %533 }
 0x113   : > { %v685_v36 = vadd.f32 %v684_v35, %v499_v33  ;;  %v686_v37 = vpop.f32.mrb[15].mxu0  ;;  %862 = vmatpush1.bf16.msra.mxu1 %v765_v27  ;;  %v741_v39 = vmax.f32 %v681_v31, 0.0 }
 0x114   : > { %v687_v38 = vadd.f32 %v686_v37, %v499_v33  ;;  %v742_v41 = vmax.f32 %v683_v34, 0.0  ;;  %v539_v34 = vpop.permute.xlu1 %538 }
 0x115   : > { %v743_v40 = vmax.f32 %v685_v36, 0.0 }
 0x116   : > { %v744_v42 = vmax.f32 %v687_v38, 0.0 }
 0x117   : > { %v767_v43 = vpack.c.bf16 %v743_v40, %v741_v39 }
 0x118   : > { %v768_v45 = vpack.c.bf16 %v744_v42, %v742_v41  ;;  %v690_v46 = vpop.f32.mrb[16].mxu0 }
 0x119   : > { %v691_v47 = vadd.f32 %v690_v46, %v504_v44  ;;  %v692_v48 = vpop.f32.mrb[17].mxu0  ;;  %v1367_v46 = vld [vmem:[%s1784_s3] sm:$0xff]  }
 0x11a   : > { %v693_v50 = vadd.f32 %v692_v48, %v504_v44  ;;  %v694_v51 = vpop.f32.mrb[18].mxu0  ;;  %863 = vmatprep.subr.bf16.mxu1 %v768_v45  ;;  %v1369_v48 = vld [vmem:[%s1784_s3 + $0x10] sm:$0xff]  }
 0x11b   : > { %v695_v52 = vadd.f32 %v694_v51, %v509_v49  ;;  %v696_v53 = vpop.f32.mrb[19].mxu0  ;;  %864 = vmatpush1.bf16.msra.mxu1 %v767_v43  ;;  %v745_v55 = vmax.f32 %v691_v47, 0.0  ;;  %v1368_v47 = vld [vmem:[%s1784_s3 + $0x8] sm:$0xff]  }
 0x11c   : > { %v697_v54 = vadd.f32 %v696_v53, %v509_v49  ;;  %v746_v57 = vmax.f32 %v693_v50, 0.0  ;;  %v1370_v49 = vld [vmem:[%s1784_s3 + $0x18] sm:$0xff]   ;;  %v796_v50 = vpop.permute.xlu0 %795 }
 0x11d   : > { %v747_v56 = vmax.f32 %v695_v52, 0.0 }
 0x11e   : > { %v748_v58 = vmax.f32 %v697_v54, 0.0  ;;  %v801_v54 = vpop.permute.xlu1 %800 }
 0x11f   : > { %v769_v59 = vpack.c.bf16 %v747_v56, %v745_v55 }
 0x120   : > { %v770_v61 = vpack.c.bf16 %v748_v58, %v746_v57  ;;  %v700_v62 = vpop.f32.mrb[20].mxu0 }
 0x121   : > { %v701_v63 = vadd.f32 %v700_v62, %v514_v60  ;;  %v702_v0 = vpop.f32.mrb[21].mxu0 }
 0x122   : > { %v703_v3 = vadd.f32 %v702_v0, %v514_v60  ;;  %v704_v4 = vpop.f32.mrb[22].mxu0  ;;  %865 = vmatprep.subr.bf16.mxu1 %v770_v61 }
 0x123   : > { %v705_v5 = vadd.f32 %v704_v4, %v519_v1  ;;  %v706_v6 = vpop.f32.mrb[23].mxu0  ;;  %866 = vmatpush1.bf16.msra.mxu1 %v769_v59  ;;  %v749_v8 = vmax.f32 %v701_v63, 0.0 }
 0x124   : > { %v707_v7 = vadd.f32 %v706_v6, %v519_v1  ;;  %v750_v10 = vmax.f32 %v703_v3, 0.0  ;;  %v806_v1 = vpop.permute.xlu0 %805 }
 0x125   : > { %v751_v9 = vmax.f32 %v705_v5, 0.0 }
 0x126   : > { %v752_v11 = vmax.f32 %v707_v7, 0.0  ;;  %v811_v7 = vpop.permute.xlu1 %810 }
 0x127   : > { %v771_v12 = vpack.c.bf16 %v751_v9, %v749_v8 }
 0x128   : > { %v772_v14 = vpack.c.bf16 %v752_v11, %v750_v10  ;;  %v710_v15 = vpop.f32.mrb[24].mxu0 }
 0x129   : > { %v711_v16 = vadd.f32 %v710_v15, %v524_v13  ;;  %v712_v17 = vpop.f32.mrb[25].mxu0 }
 0x12a   : > { %v713_v19 = vadd.f32 %v712_v17, %v524_v13  ;;  %v714_v20 = vpop.f32.mrb[26].mxu0  ;;  %867 = vmatprep.subr.bf16.mxu1 %v772_v14 }
 0x12b   : > { %v715_v21 = vadd.f32 %v714_v20, %v529_v18  ;;  %v716_v22 = vpop.f32.mrb[27].mxu0  ;;  %868 = vmatpush1.bf16.msra.mxu1 %v771_v12  ;;  %v753_v24 = vmax.f32 %v711_v16, 0.0 }
 0x12c   : > { %v717_v23 = vadd.f32 %v716_v22, %v529_v18  ;;  %v754_v26 = vmax.f32 %v713_v19, 0.0  ;;  %v816_v18 = vpop.permute.xlu0 %815 }
 0x12d   : > { %v755_v25 = vmax.f32 %v715_v21, 0.0 }
 0x12e   : > { %v756_v27 = vmax.f32 %v717_v23, 0.0  ;;  %v821_v23 = vpop.permute.xlu1 %820 }
 0x12f   : > { %v773_v28 = vpack.c.bf16 %v755_v25, %v753_v24 }
 0x130   : > { %v774_v30 = vpack.c.bf16 %v756_v27, %v754_v26  ;;  %v720_v31 = vpop.f32.mrb[28].mxu0 }
 0x131   : > { %v721_v32 = vadd.f32 %v720_v31, %v534_v29  ;;  %v722_v33 = vpop.f32.mrb[29].mxu0 }
 0x132   : > { %v723_v35 = vadd.f32 %v722_v33, %v534_v29  ;;  %v724_v36 = vpop.f32.mrb[30].mxu0  ;;  %869 = vmatprep.subr.bf16.mxu1 %v774_v30 }
 0x133   : > { %v725_v37 = vadd.f32 %v724_v36, %v539_v34  ;;  %v726_v38 = vpop.f32.mrb[31].mxu0  ;;  %870 = vmatpush1.bf16.msra.mxu1 %v773_v28  ;;  %v757_v40 = vmax.f32 %v721_v32, 0.0 }
 0x134   : > { %v727_v39 = vadd.f32 %v726_v38, %v539_v34  ;;  %v758_v42 = vmax.f32 %v723_v35, 0.0  ;;  %v826_v34 = vpop.permute.xlu0 %825 }
 0x135   : > { %v759_v41 = vmax.f32 %v725_v37, 0.0 }
 0x136   : > { %v760_v43 = vmax.f32 %v727_v39, 0.0  ;;  %v831_v39 = vpop.permute.xlu1 %830 }
 0x137   : > { %v775_v44 = vpack.c.bf16 %v759_v41, %v757_v40 }
 0x138   : > { %v776_v45 = vpack.c.bf16 %v760_v43, %v758_v42 }
 0x13a   : > { %871 = vmatprep.subr.bf16.mxu1 %v776_v45 }
 0x13b   : > { %872 = vmatpush1.bf16.msra.mxu1 %v775_v44 }
 0x13e   : > { %890 = vmatmul.mubr.bf16.vlgmr.msra.gmra.mrb[0].mxu1 %v1367_v46 }
 0x13f   : > { %899 = vmatprep.mubr.bf16.mxu1 %v1438_v2 }
 0x146   : > { %900 = vmatmul.mubr.bf16.gmra.mrb[4].mxu1 %v1368_v47 }
 0x147   : > { %909 = vmatprep.mubr.bf16.mxu1 %v1438_v2 }
 0x14e   : > { %910 = vmatmul.mubr.bf16.gmra.mrb[8].mxu1 %v1369_v48 }
 0x14f   : > { %919 = vmatprep.mubr.bf16.mxu1 %v1438_v2 }
 0x156   : > { %920 = vmatmul.mubr.bf16.gmra.mrb[12].mxu1 %v1370_v49 }
 0x157   : > { %1031 = vmatprep.mubr.bf16.mxu1 %v1438_v2 }
 0x211   : > { %v891_v51 = vpop.f32.mrb[0].mxu1 }
 0x212   : > { %v892_v52 = vadd.f32 %v891_v51, %v796_v50  ;;  %v893_v53 = vpop.f32.mrb[1].mxu1  ;;  %v1371_v51 = vld [vmem:[%s1786_s5] sm:$0xff]  }
 0x213   : > { %v894_v55 = vadd.f32 %v893_v53, %v796_v50  ;;  %v895_v56 = vpop.f32.mrb[2].mxu1  ;;  %v965_v53 = vpop.permute.xlu0 %964 }
 0x214   : > { %v896_v57 = vadd.f32 %v895_v56, %v801_v54  ;;  %v897_v58 = vpop.f32.mrb[3].mxu1  ;;  %v930_v60 = vmax.f32 %v892_v52, 0.0  ;;  %v1372_v52 = vld [vmem:[%s1786_s5 + $0x8] sm:$0xff]  }
 0x215   : > { %v898_v59 = vadd.f32 %v897_v58, %v801_v54  ;;  %v931_v62 = vmax.f32 %v894_v55, 0.0 }
 0x216   : > { %v932_v61 = vmax.f32 %v896_v57, 0.0  ;;  %v970_v57 = vpop.permute.xlu1 %969 }
 0x217   : > { %v933_v63 = vmax.f32 %v898_v59, 0.0 }
 0x218   : > { %v946_v0 = vpack.c.bf16 %v932_v61, %v930_v60 }
 0x219   : > { %v947_v3 = vpack.c.bf16 %v933_v63, %v931_v62  ;;  %v901_v4 = vpop.f32.mrb[4].mxu1 }
 0x21a   : > { %v902_v5 = vadd.f32 %v901_v4, %v806_v1  ;;  %v903_v6 = vpop.f32.mrb[5].mxu1 }
 0x21b   : > { %v904_v8 = vadd.f32 %v903_v6, %v806_v1  ;;  %v905_v9 = vpop.f32.mrb[6].mxu1  ;;  %999 = vmatprep.subr.bf16.mxu1 %v947_v3 }
 0x21c   : > { %v906_v10 = vadd.f32 %v905_v9, %v811_v7  ;;  %v907_v11 = vpop.f32.mrb[7].mxu1  ;;  %1000 = vmatpush1.bf16.msra.mxu1 %v946_v0  ;;  %v934_v13 = vmax.f32 %v902_v5, 0.0  ;;  %v975_v5 = vpop.permute.xlu0 %974 }
 0x21d   : > { %v908_v12 = vadd.f32 %v907_v11, %v811_v7  ;;  %v935_v15 = vmax.f32 %v904_v8, 0.0 }
 0x21e   : > { %v936_v14 = vmax.f32 %v906_v10, 0.0  ;;  %v980_v10 = vpop.permute.xlu1 %979 }
 0x21f   : > { %v937_v16 = vmax.f32 %v908_v12, 0.0 }
 0x220   : > { %v948_v17 = vpack.c.bf16 %v936_v14, %v934_v13 }
 0x221   : > { %v949_v19 = vpack.c.bf16 %v937_v16, %v935_v15  ;;  %v911_v20 = vpop.f32.mrb[8].mxu1 }
 0x222   : > { %v912_v21 = vadd.f32 %v911_v20, %v816_v18  ;;  %v913_v22 = vpop.f32.mrb[9].mxu1 }
 0x223   : > { %v914_v24 = vadd.f32 %v913_v22, %v816_v18  ;;  %v915_v25 = vpop.f32.mrb[10].mxu1  ;;  %1001 = vmatprep.subr.bf16.mxu1 %v949_v19  ;;  %v1373_v22 = vld [vmem:[%s1788_s7] sm:$0xff]  }
 0x224   : > { %v916_v26 = vadd.f32 %v915_v25, %v821_v23  ;;  %v917_v27 = vpop.f32.mrb[11].mxu1  ;;  %1002 = vmatpush1.bf16.msra.mxu1 %v948_v17  ;;  %v938_v29 = vmax.f32 %v912_v21, 0.0 }
 0x225   : > { %v918_v28 = vadd.f32 %v917_v27, %v821_v23  ;;  %v939_v31 = vmax.f32 %v914_v24, 0.0  ;;  %v1071_v23 = vpop.permute.xlu0 %1070  ;;  %v1076_v27 = vpop.permute.xlu1 %1075 }
 0x226   : > { %v940_v30 = vmax.f32 %v916_v26, 0.0 }
 0x227   : > { %v941_v32 = vmax.f32 %v918_v28, 0.0 }
 0x228   : > { %v950_v33 = vpack.c.bf16 %v940_v30, %v938_v29 }
 0x229   : > { %v951_v35 = vpack.c.bf16 %v941_v32, %v939_v31  ;;  %v921_v36 = vpop.f32.mrb[12].mxu1 }
 0x22a   : > { %v922_v37 = vadd.f32 %v921_v36, %v826_v34  ;;  %v923_v38 = vpop.f32.mrb[13].mxu1 }
 0x22b   : > { %v924_v40 = vadd.f32 %v923_v38, %v826_v34  ;;  %v925_v41 = vpop.f32.mrb[14].mxu1  ;;  %1003 = vmatprep.subr.bf16.mxu1 %v951_v35 }
 0x22c   : > { %v926_v42 = vadd.f32 %v925_v41, %v831_v39  ;;  %v927_v43 = vpop.f32.mrb[15].mxu1  ;;  %1004 = vmatpush1.bf16.msra.mxu1 %v950_v33  ;;  %v942_v45 = vmax.f32 %v922_v37, 0.0 }
 0x22d   : > { %v928_v44 = vadd.f32 %v927_v43, %v831_v39  ;;  %v943_v47 = vmax.f32 %v924_v40, 0.0  ;;  %v1141_v39 = vpop.permute.xlu0 %1140 }
 0x22e   : > { %v944_v46 = vmax.f32 %v926_v42, 0.0 }
 0x22f   : > { %v945_v48 = vmax.f32 %v928_v44, 0.0 }
 0x230   : > { %v952_v49 = vpack.c.bf16 %v944_v46, %v942_v45 }
 0x231   : > { %v953_v50 = vpack.c.bf16 %v945_v48, %v943_v47 }
 0x233   : > { %1005 = vmatprep.subr.bf16.mxu1 %v953_v50 }
 0x234   : > { %1006 = vmatpush1.bf16.msra.mxu1 %v952_v49 }
 0x237   : > { %1302 = vmatmul.mubr.msk.bf16.vlgmr.msra.gmra.mrb[16].mxu1 %vm992_vm1, %v1371_v51 }
 0x238   : > { %1041 = vmatprep.mubr.bf16.mxu1 %v1438_v2 }
 0x23f   : > { %1303 = vmatmul.mubr.msk.bf16.gmra.mrb[20].mxu1 %vm992_vm1, %v1372_v52 }
 0x30a   : > { %v1033_v54 = vpop.f32.mrb[16].mxu1 }
 0x30b   : > { %v1034_v55 = vadd.f32 %v1033_v54, %v965_v53  ;;  %v1035_v56 = vpop.f32.mrb[17].mxu1 }
 0x30c   : > { %v1036_v58 = vadd.f32 %v1035_v56, %v965_v53  ;;  %v1037_v59 = vpop.f32.mrb[18].mxu1 }
 0x30d   : > { %v1038_v60 = vadd.f32 %v1037_v59, %v970_v57  ;;  %v1039_v61 = vpop.f32.mrb[19].mxu1  ;;  %v1052_v63 = vmax.f32 %v1034_v55, 0.0 }
 0x30e   : > { %v1040_v62 = vadd.f32 %v1039_v61, %v970_v57  ;;  %v1053_v1 = vmax.f32 %v1036_v58, 0.0 }
 0x30f   : > { %v1054_v0 = vmax.f32 %v1038_v60, 0.0 }
 0x310   : > { %v1055_v3 = vmax.f32 %v1040_v62, 0.0 }
 0x311   : > { %v1060_v4 = vpack.c.bf16 %v1054_v0, %v1052_v63 }
 0x312   : > { %v1061_v6 = vpack.c.bf16 %v1055_v3, %v1053_v1  ;;  %v1043_v7 = vpop.f32.mrb[20].mxu1 }
 0x313   : > { %v1044_v8 = vadd.f32 %v1043_v7, %v975_v5  ;;  %v1045_v9 = vpop.f32.mrb[21].mxu1 }
 0x314   : > { %v1046_v11 = vadd.f32 %v1045_v9, %v975_v5  ;;  %v1047_v12 = vpop.f32.mrb[22].mxu1  ;;  %1087 = vmatprep.subr.bf16.mxu0 %v1061_v6 }
 0x315   : > { %v1048_v13 = vadd.f32 %v1047_v12, %v980_v10  ;;  %v1049_v14 = vpop.f32.mrb[23].mxu1  ;;  %1088 = vmatpush1.bf16.msra.mxu0 %v1060_v4  ;;  %v1056_v16 = vmax.f32 %v1044_v8, 0.0 }
 0x316   : > { %v1050_v15 = vadd.f32 %v1049_v14, %v980_v10  ;;  %v1057_v18 = vmax.f32 %v1046_v11, 0.0 }
 0x317   : > { %v1058_v17 = vmax.f32 %v1048_v13, 0.0 }
 0x318   : > { %v1059_v19 = vmax.f32 %v1050_v15, 0.0 }
 0x319   : > { %v1062_v20 = vpack.c.bf16 %v1058_v17, %v1056_v16 }
 0x31a   : > { %v1063_v21 = vpack.c.bf16 %v1059_v19, %v1057_v18 }
 0x31c   : > { %1089 = vmatprep.subr.bf16.mxu0 %v1063_v21 }
 0x31d   : > { %1090 = vmatpush1.bf16.msra.mxu0 %v1062_v20 }
 0x320   : > { %1305 = vmatmul.mubr.msk.bf16.vlgmr.msra.gmra.mrb[32].mxu0 %vm1083_vm2, %v1373_v22 }
 0x321   : > { %1178 = vmatprep.mubr.bf16.mxu0 %v1438_v2  ;;  %v1136_v2 = vld [vmem:[%s1790_s9] sm:$0xf] }
 0x3f3   : > { %v1121_v24 = vpop.f32.mrb[32].mxu0 }
 0x3f4   : > { %v1122_v25 = vadd.f32 %v1121_v24, %v1071_v23  ;;  %v1123_v26 = vpop.f32.mrb[33].mxu0 }
 0x3f5   : > { %v1124_v28 = vadd.f32 %v1123_v26, %v1071_v23  ;;  %v1125_v29 = vpop.f32.mrb[34].mxu0 }
 0x3f6   : > { %v1126_v30 = vadd.f32 %v1125_v29, %v1076_v27  ;;  %v1127_v31 = vpop.f32.mrb[35].mxu0  ;;  %v1130_v33 = vmax.f32 %v1122_v25, 0.0 }
 0x3f7   : > { %v1128_v32 = vadd.f32 %v1127_v31, %v1076_v27  ;;  %v1131_v35 = vmax.f32 %v1124_v28, 0.0 }
 0x3f8   : > { %v1132_v34 = vmax.f32 %v1126_v30, 0.0 }
 0x3f9   : > { %v1133_v36 = vmax.f32 %v1128_v32, 0.0 }
 0x3fa   : > { %v1134_v37 = vpack.c.bf16 %v1132_v34, %v1130_v33 }
 0x3fb   : > { %v1135_v38 = vpack.c.bf16 %v1133_v36, %v1131_v35 }
 0x3fd   : > { %1146 = vmatprep.subr.bf16.mxu0 %v1135_v38 }
 0x3fe   : > { %1147 = vmatpush1.bf16.msra.mxu0 %v1134_v37 }
 0x401   : > { %1306 = vmatmul.mubr.msk.bf16.vlgmr.msra.gmra.mrb[36].mxu0 %vm591_vm0, %v1136_v2 }
 0x4d4   : > { %v1180_v40 = vpop.f32.mrb[36].mxu0 }
 0x4d5   : > { %v1181_v41 = vadd.f32 %v1180_v40, %v1141_v39  ;;  %v1182_v42 = vpop.f32.mrb[37].mxu0 }
 0x4d6   : > { %v1183_v43 = vadd.f32 %v1182_v42, %v1141_v39  ;;  %v1184_v44 = vpop.f32.mrb[38].mxu0 }
 0x4d7   : > { %1187 = vst [vmem:[%s423_s16] sm:$0xff] %v1181_v41  ;;  %v1185_v45 = vpop.f32.mrb[39].mxu0 }
 0x4d8   : > { %1188 = vst [vmem:[%s423_s16 + $0x8] sm:$0xff] %v1183_v43 }
 0x4d9   : > { %1387 = shalt.err (!%p1384_p5)
}
 0x4da   : > { %s1388_s16 = scalar_lea.hbm %s1736_s29, 256  ;;  %s1392_s24 = scalar_lea.hbm %s1792_s11, 512 }
 0x4db   : > { %p1389_p7 = scmp.ne.s32.totalorder %s1736_s29, %s1388_s16  ;;  %p1393_p12 = scmp.lt.u32.totalorder %s1736_s29, %s1792_s11 }
 0x4dc   : > { %p1394_p13 = scmp.lt.u32.totalorder %s1392_s24, %s1388_s16  ;;  %p1396_p1 = scmp.lt.u32.totalorder %s1388_s16, %s1736_s29 }
 0x4dd   : > { %p1390_p10 = pnand %p1389_p7, %p1538_p6 }
 0x4de   : > { %p1395_p0 = por %p1394_p13, %p1393_p12 }
 0x4df   : > { %p1391_p11 = pneg %p1390_p10 }
 0x4e0   : > { %p1397_p2 = por %p1396_p1, %p1395_p0 }
 0x4e2   : > { %p1398_p3 = pnand %p1397_p2, %p1391_p11 }
 0x4e4   : > { %1401 = shalt.err (!%p1398_p3)
}
 0x4e5   : > { %1314 = dma.vmem_to_hbm [thread:$0]  (%p1538_p6), %s1738_s25, 256, %s1736_s29, %s1190_s30  }
 0x4e6 PF: > { %s1216_s12 = sand.u32 1, %s1424_s17   ;;  %p1317_p4 = pnand %p1271_p9, %p1542_p8 }
 0x4e7   : > { %s1217_s15 = scalar_lea.sflag [#allocation4], %s1216_s12 }
 0x4e8   : > { %1419 = dma.done.wait (!%p1317_p4), %s1217_s15, 256  }
 0x4e9   : > { %1421 = vsyncadd (!%p1317_p4), %s1217_s15, 4294967040  ;;  %p21_p5 = scmp.ge.s32.totalorder %s1523_s23, 4   ;;  %s1799_s17 = smov %s1428_s18 }
 0x4ea   : > { %s1800_s18 = smov %s1432_s19  ;;  %s1801_s19 = smov %s1536_s26 }
 0x4eb   : > { %s1802_s20 = smov %s1523_s23  ;;  %23 = sbr.rel (!%p21_p5) target bundleno = 3 (0x3), region = 142 }
 0x4f2   :  { %1222 = vsyncpa [#allocation4], 1 }
 0x4f3   :  { %1224 = vsyncpa [#allocation4 + $0x1], 1 }

</bundles_post_ra>
